<compile_context>
chip_gen: v7x
topology: tpu7x:2x2x1
jax: 0.10.0
libtpu: 0.0.40
codegen_flags: <defaults>
</compile_context>

<pallas_src>
import functools

import jax
import jax.numpy as jnp
from jax.experimental import pallas as pl
from jax.experimental.pallas import tpu as pltpu

LANES = 128
ACC_SUBLANES = 64          # accumulator depth: 8 vregs, 64 independent add chains


def _round_up(x, m):
    return (x + m - 1) // m * m


def _sublane_multiple(dtype):
    """Dtype-native sublane packing multiple (f32:8, bf16:16, int8/fp8:32)."""
    return max(8, 32 // jnp.dtype(dtype).itemsize)


def _tensorcores_per_chip():
    """TensorCores addressable per Pallas device (2 on v7x, else 1)."""
    try:
        kind = jax.devices()[0].device_kind.lower()
    except Exception:
        return 1
    return 2 if "v7" in kind else 1


def _content_loss_kernel(w_ref, x_ref, t_ref, out_ref, *,
                         rows, rows_per_tile, tiles_per_core, acc_sub):
    """Accumulate sum((x*w - t)^2) into a (1, acc_sub, 128) resident block."""
    c = pl.program_id(0)      # core-split axis (CORE_PARALLEL on v7x, else size 1)
    i = pl.program_id(1)      # reduction axis ("arbitrary", output stays resident)

    @pl.when(i == 0)
    def _():
        out_ref[...] = jnp.zeros_like(out_ref)

    w = w_ref[0]
    diff = x_ref[...].astype(jnp.float32) * w - t_ref[...].astype(jnp.float32)
    sq = diff * diff

    global_tile = c * tiles_per_core + i
    # Edge tile = partial last block, or the fully-masked dummy block a core
    # gets when the tile count is odd under a 2-way core split.
    is_edge = (global_tile + 1) * rows_per_tile > rows

    @pl.when(jnp.logical_not(is_edge))
    def _():
        # Hot path: no mask work; acc_sub independent sublane-row add chains.
        out_ref[...] += jnp.sum(sq.reshape(-1, acc_sub, LANES), axis=0)[None]

    @pl.when(is_edge)
    def _():
        # Cold path (at most one tile per core): zero rows past the valid range.
        # OOB rows contain garbage (possibly NaN); the select does not propagate
        # the unselected operand, so the result is exact.
        row_ids = (global_tile * rows_per_tile
                   + jax.lax.broadcasted_iota(jnp.int32, sq.shape, 0))
        sq_m = jnp.where(row_ids < rows, sq, 0.0)
        out_ref[...] += jnp.sum(sq_m.reshape(-1, acc_sub, LANES), axis=0)[None]


def content_loss_forward(x, target_scaled, weight, *,
                         rows_per_tile=8192, num_splits=None):
    """Pallas implementation of ContentLoss.forward.

    Args:
      x:             NCHW feature map (the `input` of forward); any float dtype.
      target_scaled: target features already multiplied by `weight`
                     (mirrors `self.target = target.detach() * weight`).
      weight:        content-loss weight (python float or scalar array; lives
                     in SMEM, so no recompile per value).
      rows_per_tile: rows of 128 lanes per grid step (8192 -> 4 MiB/input/step
                     at f32; cap chosen so 2 inputs x 2 buffers fit v7x VMEM).
      num_splits:    leading core-split factor; None = auto (2 on v7x, else 1).

    Returns:
      (output, loss): output is the input unchanged (module returns input);
                      loss is the scalar MSE(input * weight, target_scaled).
    """
    assert x.shape == target_scaled.shape
    n_elems = x.size

    w_arr = jnp.reshape(jnp.asarray(weight, dtype=jnp.float32), (1,))

    # Lane-dense view of the contiguous buffers: free reshape, no pad, no copy.
    xf = x.reshape(-1)
    tf = target_scaled.reshape(-1)
    rem = n_elems % LANES
    main = n_elems - rem
    rows = main // LANES

    total = jnp.zeros((), jnp.float32)

    if rows > 0:
        if rem == 0:
            xm, tm_ = xf, tf
        else:
            # TODO(synk): rare path (flat size not a multiple of 128) pays one
            # slice copy of the main portion; conv feature maps avoid it.
            xm, tm_ = xf[:main], tf[:main]
        x2 = xm.reshape(rows, LANES)
        t2 = tm_.reshape(rows, LANES)

        # Dtype-native sublane rounding keeps packed narrow-dtype blocks dense.
        mult = max(_sublane_multiple(x.dtype),
                   _sublane_multiple(target_scaled.dtype))
        rpt = min(_round_up(rows_per_tile, ACC_SUBLANES),
                  _round_up(rows, mult))
        # Accumulator depth: largest power-of-two sublane count dividing rpt.
        acc_sub = ACC_SUBLANES
        while rpt % acc_sub:
            acc_sub //= 2

        total_tiles = pl.cdiv(rows, rpt)
        if num_splits is None:
            num_splits = _tensorcores_per_chip()
        num_splits = max(1, min(int(num_splits), total_tiles))
        tiles_per_core = pl.cdiv(total_tiles, num_splits)

        def data_map(c, i):
            # Clamp so an odd-split dummy tile maps to a valid block; its
            # contribution is zeroed by the in-kernel edge-tile mask.
            return (jnp.minimum(c * tiles_per_core + i, total_tiles - 1), 0)

        kernel = functools.partial(
            _content_loss_kernel,
            rows=rows, rows_per_tile=rpt,
            tiles_per_core=tiles_per_core, acc_sub=acc_sub)

        # Real 2-TC split only where it exists (v7x); single-core chips keep a
        # trivial size-1 leading axis with no dummy tile and no extra traffic.
        lead_sem = pltpu.CORE_PARALLEL if num_splits > 1 else pltpu.ARBITRARY

        # 2 inputs x 2 pipeline buffers + elementwise intermediates headroom;
        # 48 MiB at the default tile size (under v7x's 64 MiB physical VMEM).
        block_bytes = rpt * LANES * (x.dtype.itemsize
                                     + target_scaled.dtype.itemsize)
        vmem_limit = min(96 * 1024 * 1024,
                         max(32 * 1024 * 1024,
                             2 * block_bytes + 32 * 1024 * 1024))

        partials = pl.pallas_call(
            kernel,
            out_shape=jax.ShapeDtypeStruct(
                (num_splits, acc_sub, LANES), jnp.float32),
            grid_spec=pltpu.PrefetchScalarGridSpec(
                num_scalar_prefetch=0,
                grid=(num_splits, tiles_per_core),
                in_specs=[
                    pl.BlockSpec(memory_space=pltpu.MemorySpace.SMEM),  # weight
                    pl.BlockSpec((rpt, LANES), data_map),
                    pl.BlockSpec((rpt, LANES), data_map),
                ],
                out_specs=pl.BlockSpec((1, acc_sub, LANES),
                                       lambda c, i: (c, 0, 0)),
            ),
            compiler_params=pltpu.CompilerParams(
                dimension_semantics=(lead_sem, pltpu.ARBITRARY),
                vmem_limit_bytes=vmem_limit,
            ),
        )(w_arr, x2, t2)
        total = total + jnp.sum(partials)

    if rem:
        # Flat remainder < 128 elements: reduce in plain JAX (tiny, one-off).
        xt = xf[main:].astype(jnp.float32)
        tt = tf[main:].astype(jnp.float32)
        d = xt * w_arr[0] - tt
        total = total + jnp.sum(d * d)

    loss = total / n_elems
    # forward() returns the input unchanged; the loss is a stored side value.
    return x, loss


if __name__ == "__main__":
    key = jax.random.PRNGKey(0)
    k_in, k_tgt = jax.random.split(key)

    # Small NCHW feature map, consistent with conv-layer activations.
    x = jax.random.normal(k_in, (2, 4, 16, 16), dtype=jnp.float32)
    target_raw = jax.random.normal(k_tgt, (2, 4, 16, 16), dtype=jnp.float32)

    weight = 0.75  # deterministic synthetic content weight
    target_scaled = target_raw * weight  # self.target = target.detach() * weight

    fwd = jax.jit(content_loss_forward)
    out, loss = fwd(x, target_scaled, weight)
    jax.block_until_ready((out, loss))

    # Reference check against plain-JAX semantics of nn.MSELoss (mean reduction).
    ref_loss = jnp.mean((x * weight - target_scaled) ** 2)
    assert jnp.allclose(loss, ref_loss, rtol=1e-5, atol=1e-6), (loss, ref_loss)
    assert bool(jnp.all(out == x))

    print("KERNEL_OK")
</pallas_src>

<mosaic_0001>
module attributes {stable_mosaic.version = 11 : i64} {
  func.func @_content_loss_kernel(%arg0: i32, %arg1: i32, %arg2: memref<1xf32, #tpu.memory_space<smem>>, %arg3: memref<16x128xf32, #tpu.memory_space<vmem>>, %arg4: memref<16x128xf32, #tpu.memory_space<vmem>>, %arg5: memref<1x16x128xf32, #tpu.memory_space<vmem>>) attributes {dimension_semantics = [#tpu.dimension_semantics<arbitrary>, #tpu.dimension_semantics<arbitrary>], iteration_bounds = array<i64: 1, 1>, scalar_prefetch = 0 : i64, scratch_operands = 0 : i64, tpu.core_type = #tpu.core_type<tc>, window_params = [{transform_indices = @transform_0, window_bounds = array<i64: 1>}, {transform_indices = @transform_1, window_bounds = array<i64: 16, 128>}, {transform_indices = @transform_2, window_bounds = array<i64: 16, 128>}, {transform_indices = @transform_3, window_bounds = array<i64: 1, 16, 128>}]} {
    %c0_i32 = arith.constant 0 : i32
    %0 = arith.cmpi eq, %arg1, %c0_i32 : i32
    %1 = arith.extui %0 : i1 to i32
    %c0_i32_0 = arith.constant 0 : i32
    %2 = arith.cmpi ne, %1, %c0_i32_0 : i32
    scf.if %2 {
      %cst = arith.constant 0.000000e+00 : f32
      %20 = vector.broadcast %cst : f32 to vector<1x16x128xf32>
      %c0_9 = arith.constant 0 : index
      %c0_10 = arith.constant 0 : index
      %c0_11 = arith.constant 0 : index
      %21 = vector.load %arg5[%c0_9, %c0_10, %c0_11] : memref<1x16x128xf32, #tpu.memory_space<vmem>>, vector<1x16x128xf32>
      tpu.vector_store %arg5[%c0_9, %c0_10, %c0_11], %20 {strides = array<i32>} : memref<1x16x128xf32, #tpu.memory_space<vmem>>, vector<1x16x128xf32>,
    } else {
    }
    %c0 = arith.constant 0 : index
    %3 = memref.load %arg2[%c0] : memref<1xf32, #tpu.memory_space<smem>>
    %c0_1 = arith.constant 0 : index
    %c0_2 = arith.constant 0 : index
    %4 = vector.load %arg3[%c0_1, %c0_2] : memref<16x128xf32, #tpu.memory_space<vmem>>, vector<16x128xf32>
    %5 = vector.broadcast %3 : f32 to vector<16x128xf32>
    %6 = arith.mulf %4, %5 : vector<16x128xf32>
    %c0_3 = arith.constant 0 : index
    %c0_4 = arith.constant 0 : index
    %7 = vector.load %arg4[%c0_3, %c0_4] : memref<16x128xf32, #tpu.memory_space<vmem>>, vector<16x128xf32>
    %8 = arith.subf %6, %7 : vector<16x128xf32>
    %9 = arith.mulf %8, %8 : vector<16x128xf32>
    %c1_i32 = arith.constant 1 : i32
    %10 = arith.muli %arg0, %c1_i32 : i32
    %11 = arith.addi %10, %arg1 : i32
    %c1_i32_5 = arith.constant 1 : i32
    %12 = arith.addi %11, %c1_i32_5 : i32
    %c16_i32 = arith.constant 16 : i32
    %13 = arith.muli %12, %c16_i32 : i32
    %c16_i32_6 = arith.constant 16 : i32
    %14 = arith.cmpi sgt, %13, %c16_i32_6 : i32
    %true = arith.constant true
    %15 = arith.xori %14, %true : i1
    %16 = arith.extui %15 : i1 to i32
    %c0_i32_7 = arith.constant 0 : i32
    %17 = arith.cmpi ne, %16, %c0_i32_7 : i32
    scf.if %17 {
      %c0_9 = arith.constant 0 : index
      %c0_10 = arith.constant 0 : index
      %c0_11 = arith.constant 0 : index
      %20 = vector.load %arg5[%c0_9, %c0_10, %c0_11] : memref<1x16x128xf32, #tpu.memory_space<vmem>>, vector<1x16x128xf32>
      %21 = vector.shape_cast %9 : vector<16x128xf32> to vector<1x16x128xf32>
      %cst = arith.constant dense<0.000000e+00> : vector<16x128xf32>
      %22 = vector.multi_reduction <add>, %21, %cst [0] : vector<1x16x128xf32> to vector<16x128xf32>
      %23 = vector.shape_cast %22 : vector<16x128xf32> to vector<1x16x128xf32>
      %24 = arith.addf %20, %23 : vector<1x16x128xf32>
      %c0_12 = arith.constant 0 : index
      %c0_13 = arith.constant 0 : index
      %c0_14 = arith.constant 0 : index
      %25 = vector.load %arg5[%c0_12, %c0_13, %c0_14] : memref<1x16x128xf32, #tpu.memory_space<vmem>>, vector<1x16x128xf32>
      tpu.vector_store %arg5[%c0_12, %c0_13, %c0_14], %24 {strides = array<i32>} : memref<1x16x128xf32, #tpu.memory_space<vmem>>, vector<1x16x128xf32>,
    } else {
    }
    %18 = arith.extui %14 : i1 to i32
    %c0_i32_8 = arith.constant 0 : i32
    %19 = arith.cmpi ne, %18, %c0_i32_8 : i32
    scf.if %19 {
      %c16_i32_9 = arith.constant 16 : i32
      %20 = arith.muli %11, %c16_i32_9 : i32
      %21 = tpu.iota {dimensions = array<i32: 0>} : vector<16x128xi32>
      %22 = vector.broadcast %20 : i32 to vector<16x128xi32>
      %23 = arith.addi %22, %21 : vector<16x128xi32>
      %c16_i32_10 = arith.constant 16 : i32
      %24 = vector.broadcast %c16_i32_10 : i32 to vector<16x128xi32>
      %25 = arith.cmpi slt, %23, %24 : vector<16x128xi32>
      %cst = arith.constant 0.000000e+00 : f32
      %26 = vector.broadcast %cst : f32 to vector<16x128xf32>
      %27 = arith.select %25, %9, %26 : vector<16x128xi1>, vector<16x128xf32>
      %c0_11 = arith.constant 0 : index
      %c0_12 = arith.constant 0 : index
      %c0_13 = arith.constant 0 : index
      %28 = vector.load %arg5[%c0_11, %c0_12, %c0_13] : memref<1x16x128xf32, #tpu.memory_space<vmem>>, vector<1x16x128xf32>
      %29 = vector.shape_cast %27 : vector<16x128xf32> to vector<1x16x128xf32>
      %cst_14 = arith.constant dense<0.000000e+00> : vector<16x128xf32>
      %30 = vector.multi_reduction <add>, %29, %cst_14 [0] : vector<1x16x128xf32> to vector<16x128xf32>
      %31 = vector.shape_cast %30 : vector<16x128xf32> to vector<1x16x128xf32>
      %32 = arith.addf %28, %31 : vector<1x16x128xf32>
      %c0_15 = arith.constant 0 : index
      %c0_16 = arith.constant 0 : index
      %c0_17 = arith.constant 0 : index
      %33 = vector.load %arg5[%c0_15, %c0_16, %c0_17] : memref<1x16x128xf32, #tpu.memory_space<vmem>>, vector<1x16x128xf32>
      tpu.vector_store %arg5[%c0_15, %c0_16, %c0_17], %32 {strides = array<i32>} : memref<1x16x128xf32, #tpu.memory_space<vmem>>, vector<1x16x128xf32>,
    } else {
    }
    return
  }
  func.func @transform_0(%arg0: i32, %arg1: i32) -> i32 {
    %c0_i32 = arith.constant 0 : i32
    %c0_i32_0 = arith.constant 0 : i32
    return %c0_i32 : i32
  }
  func.func @transform_1(%arg0: i32, %arg1: i32) -> (i32, i32) {
    %c1_i32 = arith.constant 1 : i32
    %0 = arith.muli %arg0, %c1_i32 : i32
    %1 = arith.addi %0, %arg1 : i32
    %c0_i32 = arith.constant 0 : i32
    %2 = arith.minsi %1, %c0_i32 : i32
    %c0_i32_0 = arith.constant 0 : i32
    %c0_i32_1 = arith.constant 0 : i32
    return %2, %c0_i32_0 : i32, i32
  }
  func.func @transform_2(%arg0: i32, %arg1: i32) -> (i32, i32) {
    %c1_i32 = arith.constant 1 : i32
    %0 = arith.muli %arg0, %c1_i32 : i32
    %1 = arith.addi %0, %arg1 : i32
    %c0_i32 = arith.constant 0 : i32
    %2 = arith.minsi %1, %c0_i32 : i32
    %c0_i32_0 = arith.constant 0 : i32
    %c0_i32_1 = arith.constant 0 : i32
    return %2, %c0_i32_0 : i32, i32
  }
  func.func @transform_3(%arg0: i32, %arg1: i32) -> (i32, i32, i32) {
    %c0_i32 = arith.constant 0 : i32
    %c0_i32_0 = arith.constant 0 : i32
    %c0_i32_1 = arith.constant 0 : i32
    return %arg0, %c0_i32, %c0_i32_0 : i32, i32, i32
  }
}

</mosaic_0001>

<bundles_post_ra>
// kernel: content_loss_forward.1
= control target key start
LH: loop header
LB: loop body
LE: loop exit
PB: predicated region body
PF: predicated region fallthrough
CT: control target
= control target key end

     0   :  { %s193_s0 = inlined_call_operand.<no memory space> [shape: f32[1], index: 0, kind: input, shape index: {}]   ;;  %s194_s1 = inlined_call_operand.vmem [shape: f32[16,128], index: 1, kind: input, shape index: {}]   ;;  %s195_s2 = inlined_call_operand.vmem [shape: f32[16,128], index: 2, kind: input, shape index: {}]   ;;  %s196_s3 = inlined_call_operand.vmem [shape: f32[1,16,128], index: 3, kind: output, shape index: {}]  }
   0x1   :  { %v86_v0 = vld [vmem:[%s194_s1] sm:$0xff]  ;;  %v88_v1 = vstv %s193_s0  ;;  %v87_v3 = vld [vmem:[%s194_s1 + $0x8] sm:$0xff] }
   0x2   :  { %v91_v2 = vld [vmem:[%s195_s2] sm:$0xff]  ;;  %v89_v4 = vmul.f32 %v88_v1, %v86_v0  ;;  %v90_v5 = vmul.f32 %v88_v1, %v87_v3  ;;  %v92_v6 = vld [vmem:[%s195_s2 + $0x8] sm:$0xff] }
   0x4   :  { %v93_v7 = vsub.f32 %v89_v4, %v91_v2  ;;  %v94_v8 = vsub.f32 %v90_v5, %v92_v6 }
   0x6   :  { %v95_v9 = vmul.f32 %v93_v7, %v93_v7  ;;  %v96_v10 = vmul.f32 %v94_v8, %v94_v8 }
   0x8   :  { %111 = vst [vmem:[%s196_s3] sm:$0xff] %v95_v9  ;;  %112 = vst [vmem:[%s196_s3 + $0x8] sm:$0xff] %v96_v10 }

</bundles_post_ra>
